<compile_context>
chip_gen: v7x
topology: tpu7x:2x2x1
jax: 0.10.0
libtpu: 0.0.40
codegen_flags: <defaults>
</compile_context>

<pallas_src>
import functools

import jax
import jax.numpy as jnp
from jax.experimental import pallas as pl
from jax.experimental.pallas import tpu as pltpu

LANE = 128                       # TPU lane width
TARGET_BLOCK_BYTES = 2 * 1024 * 1024   # ~2 MiB logits block (HBM-roofline sweet spot)
MAX_TILE = 32768                 # hard cap on positions per grid step
VMEM_LIMIT_BYTES = 32 * 1024 * 1024    # safe on v5e/v6e (128 MiB) and v7x (64 MiB)


def _round_up(x, m):
    return ((x + m - 1) // m) * m


def _ce_kernel(logit_ref, tgt_ref, wpos_ref, out_ref, num_acc, den_acc, *, hw, tile):
    """Weighted NLL(log_softmax) partial sums over one lane tile of one sample.

    logit_ref: VMEM (1, C, tile)      -- logits, classes on sublanes, positions on lanes
    tgt_ref  : VMEM (1, 1, tile) i32  -- target class index per position
    wpos_ref : VMEM (1, 1, tile) f32  -- per-position weight (0 where ignored/invalid)
    out_ref  : SMEM (1, 1, 2)    f32  -- [sum(w * nll), sum(w)] for this sample
    num_acc  : VMEM (1, tile)    f32  -- vector accumulator for weighted NLL
    den_acc  : VMEM (1, tile)    f32  -- vector accumulator for weights
    """
    t = pl.program_id(1)

    @pl.when(t == 0)
    def _init():
        num_acc[...] = jnp.zeros_like(num_acc)
        den_acc[...] = jnp.zeros_like(den_acc)

    x = logit_ref[0].astype(jnp.float32)          # (C, tile)
    tgt = tgt_ref[0]                              # (1, tile) i32
    w_pos = wpos_ref[0]                           # (1, tile) f32

    # Ragged-tail mask: the last lane tile of each sample may be partial, and the
    # out-of-bounds region of the block holds unspecified data (possibly NaN/Inf).
    lane = jax.lax.broadcasted_iota(jnp.int32, (1, tile), 1)
    in_bounds = lane < (hw - t * tile)            # (1, tile) bool

    # Fused numerically-stable log-softmax + target select:
    #   nll = log(sum(exp(x - m))) - (x_target - m)   (the m terms cancel).
    m = jnp.max(x, axis=0, keepdims=True)                               # (1, tile)
    xm = x - m                                                          # (C, tile)
    sumexp = jnp.sum(jnp.exp(xm), axis=0, keepdims=True)                # (1, tile)
    cls = jax.lax.broadcasted_iota(jnp.int32, x.shape, 0)               # (C, tile)
    picked = jnp.sum(jnp.where(cls == tgt, xm, 0.0), axis=0, keepdims=True)
    nll = jnp.log(sumexp) - picked                                      # (1, tile)

    # ignore_index / out-of-range targets already have w_pos == 0 (wrapper);
    # out-of-bounds lanes are excluded via jnp.where so garbage can't leak NaN.
    num_acc[...] += jnp.where(in_bounds, w_pos * nll, 0.0)
    den_acc[...] += jnp.where(in_bounds, w_pos, 0.0)

    @pl.when(t == pl.num_programs(1) - 1)
    def _finalize():
        out_ref[0, 0, 0] = jnp.sum(num_acc[...])
        out_ref[0, 0, 1] = jnp.sum(den_acc[...])


def cross_entropy_pallas(prediction, target, class_weights, *,
                         ignore_index=-100, reduction='mean'):
    """prediction: (N, C, *spatial) logits; target: (N, *spatial) int classes."""
    n, c = int(prediction.shape[0]), int(prediction.shape[1])
    spatial = tuple(int(s) for s in prediction.shape[2:])
    assert tuple(int(s) for s in target.shape) == (n,) + spatial, \
        "target must match prediction with the channel axis removed"

    hw = 1
    for s in spatial:
        hw *= s

    # Free reshapes only (no transpose / no padding copy of the logits).
    logits = prediction.reshape(n, c, hw)                       # (N, C, HW)
    tgt = target.astype(jnp.int32).reshape(n, 1, hw)            # (N, 1, HW)

    # Per-position weight lookup done once here (cheap O(M) gather) so the
    # kernel skips a full (C, tile) one-hot weight pass.  Invalid / ignored
    # targets get weight 0 and therefore contribute to neither sum.
    # TODO(synk): torch raises on out-of-range (non-ignore) targets; here they
    # are silently dropped.
    w_vec = class_weights.astype(jnp.float32)                   # (C,)
    valid = (tgt != ignore_index) & (tgt >= 0) & (tgt < c)
    safe = jnp.clip(tgt, 0, c - 1)
    w_pos = jnp.where(valid, w_vec[safe], 0.0).astype(jnp.float32)   # (N, 1, HW)

    # Tile size from a VMEM budget: keep the logits block ~2 MiB (lane aligned),
    # so the DMA pipeline saturates HBM instead of paying per-step overhead on
    # tiny blocks.  bf16 logits stay bf16 through the DMA (halves HBM bytes).
    dtype_bytes = jnp.dtype(prediction.dtype).itemsize
    tile = (TARGET_BLOCK_BYTES // max(1, c * dtype_bytes)) // LANE * LANE
    tile = max(LANE, min(tile, MAX_TILE, _round_up(hw, LANE)))
    num_tiles = pl.cdiv(hw, tile)
    # TODO(synk): vocab-scale C (where a single (C, 128) column overflows VMEM)
    # needs a class-tiled online log-sum-exp; not implemented here.

    grid = (n, num_tiles)
    kernel = functools.partial(_ce_kernel, hw=hw, tile=tile)

    sums = pl.pallas_call(
        kernel,
        out_shape=jax.ShapeDtypeStruct((n, 1, 2), jnp.float32),
        grid=grid,
        in_specs=[
            pl.BlockSpec((1, c, tile), lambda b, t: (b, 0, t)),   # logits tile
            pl.BlockSpec((1, 1, tile), lambda b, t: (b, 0, t)),   # target tile
            pl.BlockSpec((1, 1, tile), lambda b, t: (b, 0, t)),   # per-position weight
        ],
        out_specs=pl.BlockSpec((1, 1, 2), lambda b, t: (b, 0, 0),
                               memory_space=pltpu.MemorySpace.SMEM),
        scratch_shapes=[pltpu.VMEM((1, tile), jnp.float32),
                        pltpu.VMEM((1, tile), jnp.float32)],
        compiler_params=pltpu.CompilerParams(
            # batch axis parallel (megacore split on v7x; per-sample output rows
            # and per-core scratch => no shared-accumulator race), position axis
            # is the reduction.
            dimension_semantics=("parallel", "arbitrary"),
            vmem_limit_bytes=VMEM_LIMIT_BYTES,
        ),
        cost_estimate=pl.CostEstimate(
            flops=8 * c * hw * n,
            transcendentals=(c + 1) * hw * n,
            bytes_accessed=n * hw * (c * dtype_bytes + 8) + n * 8,
        ),
    )(logits, tgt, w_pos)

    num = jnp.sum(sums[:, 0, 0])
    den = jnp.sum(sums[:, 0, 1])
    if reduction == 'mean':
        return num / den
    if reduction == 'sum':
        return num
    # TODO(synk): reduction='none' (per-position losses) not implemented in the Pallas path.
    raise NotImplementedError(f"reduction={reduction!r} is not supported")


class CrossEntropyLossPallas:
    """JAX/Pallas port of batchflow's `CrossEntropyLoss` forward pass."""

    def __init__(self, squeeze=False, weight=None, size_average=None,
                 ignore_index=-100, reduce=None, reduction='mean'):
        del size_average, reduce  # legacy torch args; `reduction` governs behavior
        self.squeeze = squeeze
        self.weight = weight
        self.ignore_index = int(ignore_index)
        self.reduction = reduction
        self.dynamic = isinstance(weight, str) or callable(weight)

    def __call__(self, prediction, target):
        target = target.astype(jnp.int32)
        if self.squeeze:
            target = jnp.squeeze(target, axis=1)
        num_classes = int(prediction.shape[1])

        if self.dynamic:
            # Single-pass class histogram (replaces the per-class loop over the
            # whole target tensor); support_i = count(target == i) + 1.
            tflat = target.reshape(-1)
            in_range = ((tflat >= 0) & (tflat < num_classes)).astype(jnp.float32)
            safe = jnp.clip(tflat, 0, num_classes - 1)
            support = jnp.zeros((num_classes,), jnp.float32).at[safe].add(in_range) + 1.0

            if self.weight in ('dynamic', 'inverse', 'adaptive'):
                weights = 1.0 / support
            elif self.weight == 'proportional':
                weights = support
            elif callable(self.weight):
                # Mirror torch: callable is applied to each class's (scalar) support.
                weights = jnp.stack([jnp.asarray(self.weight(support[i]), jnp.float32)
                                     for i in range(num_classes)])
            else:
                raise ValueError(
                    "weight must be 'dynamic', 'inverse', 'adaptive', "
                    f"'proportional' or callable but it is {self.weight!r}")
            weights = weights / jnp.sum(weights)
        elif self.weight is not None:
            weights = jnp.asarray(self.weight, jnp.float32)
        else:
            weights = jnp.ones((num_classes,), jnp.float32)

        return cross_entropy_pallas(prediction, target, weights,
                                    ignore_index=self.ignore_index,
                                    reduction=self.reduction)


def _reference_ce(prediction, target, weights, ignore_index, reduction='mean'):
    """Pure-JAX reference: weighted cross-entropy with ignore_index."""
    c = prediction.shape[1]
    x = jnp.moveaxis(prediction, 1, -1).astype(jnp.float32)     # (..., C)
    m = jnp.max(x, axis=-1, keepdims=True)
    lse = (jnp.log(jnp.sum(jnp.exp(x - m), axis=-1, keepdims=True)) + m)[..., 0]
    t_safe = jnp.clip(target, 0, c - 1)
    picked = jnp.take_along_axis(x, t_safe[..., None], axis=-1)[..., 0]
    nll = lse - picked
    valid = (target != ignore_index).astype(jnp.float32)
    w_pos = weights[t_safe] * valid
    total = jnp.sum(w_pos * nll)
    if reduction == 'sum':
        return total
    return total / jnp.sum(w_pos)


if __name__ == "__main__":
    key = jax.random.PRNGKey(0)
    kp, kt, kp2, kt2 = jax.random.split(key, 4)

    # --- Test 1: default unweighted mean CE, squeeze=True, some ignored positions.
    N, C, H, W = 2, 4, 16, 16
    prediction = jax.random.normal(kp, (N, C, H, W), dtype=jnp.float32)
    target = jax.random.randint(kt, (N, 1, H, W), 0, C, dtype=jnp.int32)
    target = target.at[0, 0, 0, :3].set(-100)
    tgt_sq = jnp.squeeze(target, axis=1)

    module = CrossEntropyLossPallas(squeeze=True)
    out = module(prediction, target)
    jax.block_until_ready(out)
    ref = _reference_ce(prediction, tgt_sq, jnp.ones((C,), jnp.float32), -100)
    assert jnp.allclose(out, ref, rtol=1e-5, atol=1e-5), (out, ref)

    # --- Test 2: dynamic ('inverse') per-class weights.
    module_dyn = CrossEntropyLossPallas(squeeze=True, weight='inverse')
    out_dyn = module_dyn(prediction, target)
    jax.block_until_ready(out_dyn)
    supports = jnp.stack(
        [jnp.sum(tgt_sq == i) + 1 for i in range(C)]).astype(jnp.float32)
    w_dyn = 1.0 / supports
    w_dyn = w_dyn / jnp.sum(w_dyn)
    ref_dyn = _reference_ce(prediction, tgt_sq, w_dyn, -100)
    assert jnp.allclose(out_dyn, ref_dyn, rtol=1e-5, atol=1e-5), (out_dyn, ref_dyn)

    # --- Test 3: explicit weight vector, odd spatial size (exercises the partial
    # lane tile / in-kernel ragged-tail mask), reduction='sum'.
    N2, C2, H2, W2 = 2, 4, 10, 10
    pred2 = jax.random.normal(kp2, (N2, C2, H2, W2), dtype=jnp.float32)
    tgt2 = jax.random.randint(kt2, (N2, H2, W2), 0, C2, dtype=jnp.int32)
    tgt2 = tgt2.at[1, 0, :2].set(-100)
    w_vec = jnp.array([0.5, 1.0, 2.0, 0.25], jnp.float32)
    module_w = CrossEntropyLossPallas(weight=w_vec, reduction='sum')
    out_w = module_w(pred2, tgt2)
    jax.block_until_ready(out_w)
    ref_w = _reference_ce(pred2, tgt2, w_vec, -100, reduction='sum')
    assert jnp.allclose(out_w, ref_w, rtol=1e-5, atol=1e-5), (out_w, ref_w)

    print("KERNEL_OK")
</pallas_src>

<mosaic_0001>
module attributes {stable_mosaic.version = 11 : i64} {
  func.func @_ce_kernel(%arg0: i32, %arg1: i32, %arg2: memref<1x4x256xf32, #tpu.memory_space<vmem>>, %arg3: memref<1x1x256xi32, #tpu.memory_space<vmem>>, %arg4: memref<1x1x256xf32, #tpu.memory_space<vmem>>, %arg5: memref<1x1x2xf32, #tpu.memory_space<smem>>, %arg6: memref<1x256xf32, #tpu.memory_space<vmem>>, %arg7: memref<1x256xf32, #tpu.memory_space<vmem>>) attributes {dimension_semantics = [#tpu.dimension_semantics<parallel>, #tpu.dimension_semantics<arbitrary>], iteration_bounds = array<i64: 2, 1>, scalar_prefetch = 0 : i64, scratch_operands = 2 : i64, tpu.core_type = #tpu.core_type<tc>, window_params = [{transform_indices = @transform_0, window_bounds = array<i64: 1, 4, 256>}, {transform_indices = @transform_1, window_bounds = array<i64: 1, 1, 256>}, {transform_indices = @transform_2, window_bounds = array<i64: 1, 1, 256>}, {transform_indices = @transform_3, window_bounds = array<i64: 1, 1, 2>}]} {
    %c0_i32 = arith.constant 0 : i32
    %0 = arith.cmpi eq, %arg1, %c0_i32 : i32
    %1 = arith.extui %0 : i1 to i32
    %c0_i32_0 = arith.constant 0 : i32
    %2 = arith.cmpi ne, %1, %c0_i32_0 : i32
    scf.if %2 {
      %cst_25 = arith.constant 0.000000e+00 : f32
      %44 = vector.broadcast %cst_25 : f32 to vector<1x256xf32>
      %c0_26 = arith.constant 0 : index
      %c0_27 = arith.constant 0 : index
      %45 = vector.load %arg6[%c0_26, %c0_27] : memref<1x256xf32, #tpu.memory_space<vmem>>, vector<1x256xf32>
      tpu.vector_store %arg6[%c0_26, %c0_27], %44 {strides = array<i32>} : memref<1x256xf32, #tpu.memory_space<vmem>>, vector<1x256xf32>,
      %cst_28 = arith.constant 0.000000e+00 : f32
      %46 = vector.broadcast %cst_28 : f32 to vector<1x256xf32>
      %c0_29 = arith.constant 0 : index
      %c0_30 = arith.constant 0 : index
      %47 = vector.load %arg7[%c0_29, %c0_30] : memref<1x256xf32, #tpu.memory_space<vmem>>, vector<1x256xf32>
      tpu.vector_store %arg7[%c0_29, %c0_30], %46 {strides = array<i32>} : memref<1x256xf32, #tpu.memory_space<vmem>>, vector<1x256xf32>,
    } else {
    }
    %c0 = arith.constant 0 : index
    %c0_1 = arith.constant 0 : index
    %c0_2 = arith.constant 0 : index
    %3 = vector.load %arg2[%c0, %c0_1, %c0_2] : memref<1x4x256xf32, #tpu.memory_space<vmem>>, vector<1x4x256xf32>
    %4 = vector.shape_cast %3 : vector<1x4x256xf32> to vector<4x256xf32>
    %c0_3 = arith.constant 0 : index
    %c0_4 = arith.constant 0 : index
    %c0_5 = arith.constant 0 : index
    %5 = vector.load %arg3[%c0_3, %c0_4, %c0_5] : memref<1x1x256xi32, #tpu.memory_space<vmem>>, vector<1x1x256xi32>
    %6 = vector.shape_cast %5 : vector<1x1x256xi32> to vector<1x256xi32>
    %c0_6 = arith.constant 0 : index
    %c0_7 = arith.constant 0 : index
    %c0_8 = arith.constant 0 : index
    %7 = vector.load %arg4[%c0_6, %c0_7, %c0_8] : memref<1x1x256xf32, #tpu.memory_space<vmem>>, vector<1x1x256xf32>
    %8 = vector.shape_cast %7 : vector<1x1x256xf32> to vector<1x256xf32>
    %9 = tpu.iota {dimensions = array<i32: 1>} : vector<1x256xi32>
    %c256_i32 = arith.constant 256 : i32
    %10 = arith.muli %arg1, %c256_i32 : i32
    %c256_i32_9 = arith.constant 256 : i32
    %11 = arith.subi %c256_i32_9, %10 : i32
    %12 = vector.broadcast %11 : i32 to vector<1x256xi32>
    %13 = arith.cmpi slt, %9, %12 : vector<1x256xi32>
    %cst = arith.constant dense<0xFF800000> : vector<256xf32>
    %14 = vector.multi_reduction <maximumf>, %4, %cst [0] : vector<4x256xf32> to vector<256xf32>
    %15 = vector.shape_cast %14 : vector<256xf32> to vector<1x256xf32>
    %16 = vector.broadcast %15 : vector<1x256xf32> to vector<4x256xf32>
    %17 = arith.subf %4, %16 : vector<4x256xf32>
    %18 = math.exp %17 : vector<4x256xf32>
    %cst_10 = arith.constant dense<0.000000e+00> : vector<256xf32>
    %19 = vector.multi_reduction <add>, %18, %cst_10 [0] : vector<4x256xf32> to vector<256xf32>
    %20 = vector.shape_cast %19 : vector<256xf32> to vector<1x256xf32>
    %21 = tpu.iota {dimensions = array<i32: 0>} : vector<4x256xi32>
    %22 = vector.broadcast %6 : vector<1x256xi32> to vector<4x256xi32>
    %23 = arith.cmpi eq, %21, %22 : vector<4x256xi32>
    %cst_11 = arith.constant 0.000000e+00 : f32
    %24 = vector.broadcast %cst_11 : f32 to vector<4x256xf32>
    %25 = arith.select %23, %17, %24 : vector<4x256xi1>, vector<4x256xf32>
    %cst_12 = arith.constant dense<0.000000e+00> : vector<256xf32>
    %26 = vector.multi_reduction <add>, %25, %cst_12 [0] : vector<4x256xf32> to vector<256xf32>
    %27 = vector.shape_cast %26 : vector<256xf32> to vector<1x256xf32>
    %28 = math.log %20 : vector<1x256xf32>
    %29 = arith.subf %28, %27 : vector<1x256xf32>
    %c0_13 = arith.constant 0 : index
    %c0_14 = arith.constant 0 : index
    %30 = vector.load %arg6[%c0_13, %c0_14] : memref<1x256xf32, #tpu.memory_space<vmem>>, vector<1x256xf32>
    %31 = arith.mulf %8, %29 : vector<1x256xf32>
    %cst_15 = arith.constant 0.000000e+00 : f32
    %32 = vector.broadcast %cst_15 : f32 to vector<1x256xf32>
    %33 = arith.select %13, %31, %32 : vector<1x256xi1>, vector<1x256xf32>
    %34 = arith.addf %30, %33 : vector<1x256xf32>
    %c0_16 = arith.constant 0 : index
    %c0_17 = arith.constant 0 : index
    %35 = vector.load %arg6[%c0_16, %c0_17] : memref<1x256xf32, #tpu.memory_space<vmem>>, vector<1x256xf32>
    tpu.vector_store %arg6[%c0_16, %c0_17], %34 {strides = array<i32>} : memref<1x256xf32, #tpu.memory_space<vmem>>, vector<1x256xf32>,
    %c0_18 = arith.constant 0 : index
    %c0_19 = arith.constant 0 : index
    %36 = vector.load %arg7[%c0_18, %c0_19] : memref<1x256xf32, #tpu.memory_space<vmem>>, vector<1x256xf32>
    %cst_20 = arith.constant 0.000000e+00 : f32
    %37 = vector.broadcast %cst_20 : f32 to vector<1x256xf32>
    %38 = arith.select %13, %8, %37 : vector<1x256xi1>, vector<1x256xf32>
    %39 = arith.addf %36, %38 : vector<1x256xf32>
    %c0_21 = arith.constant 0 : index
    %c0_22 = arith.constant 0 : index
    %40 = vector.load %arg7[%c0_21, %c0_22] : memref<1x256xf32, #tpu.memory_space<vmem>>, vector<1x256xf32>
    tpu.vector_store %arg7[%c0_21, %c0_22], %39 {strides = array<i32>} : memref<1x256xf32, #tpu.memory_space<vmem>>, vector<1x256xf32>,
    %c0_i32_23 = arith.constant 0 : i32
    %41 = arith.cmpi eq, %arg1, %c0_i32_23 : i32
    %42 = arith.extui %41 : i1 to i32
    %c0_i32_24 = arith.constant 0 : i32
    %43 = arith.cmpi ne, %42, %c0_i32_24 : i32
    scf.if %43 {
      %c0_25 = arith.constant 0 : index
      %c0_26 = arith.constant 0 : index
      %44 = vector.load %arg6[%c0_25, %c0_26] : memref<1x256xf32, #tpu.memory_space<vmem>>, vector<1x256xf32>
      %45 = vector.shape_cast %44 : vector<1x256xf32> to vector<1x1x256xf32>
      %cst_27 = arith.constant dense<0.000000e+00> : vector<1xf32>
      %46 = vector.multi_reduction <add>, %45, %cst_27 [1, 2] : vector<1x1x256xf32> to vector<1xf32>
      %47 = vector.shape_cast %46 : vector<1xf32> to vector<1x1x1xf32>
      %48 = vector.extract %47[0, 0, 0] : f32 from vector<1x1x1xf32>
      %c0_28 = arith.constant 0 : index
      %c0_29 = arith.constant 0 : index
      %c0_30 = arith.constant 0 : index
      %49 = memref.load %arg5[%c0_28, %c0_29, %c0_30] : memref<1x1x2xf32, #tpu.memory_space<smem>>
      memref.store %48, %arg5[%c0_28, %c0_29, %c0_30] : memref<1x1x2xf32, #tpu.memory_space<smem>>
      %c0_31 = arith.constant 0 : index
      %c0_32 = arith.constant 0 : index
      %50 = vector.load %arg7[%c0_31, %c0_32] : memref<1x256xf32, #tpu.memory_space<vmem>>, vector<1x256xf32>
      %51 = vector.shape_cast %50 : vector<1x256xf32> to vector<1x1x256xf32>
      %cst_33 = arith.constant dense<0.000000e+00> : vector<1xf32>
      %52 = vector.multi_reduction <add>, %51, %cst_33 [1, 2] : vector<1x1x256xf32> to vector<1xf32>
      %53 = vector.shape_cast %52 : vector<1xf32> to vector<1x1x1xf32>
      %54 = vector.extract %53[0, 0, 0] : f32 from vector<1x1x1xf32>
      %c0_34 = arith.constant 0 : index
      %c0_35 = arith.constant 0 : index
      %c1 = arith.constant 1 : index
      %55 = memref.load %arg5[%c0_34, %c0_35, %c1] : memref<1x1x2xf32, #tpu.memory_space<smem>>
      memref.store %54, %arg5[%c0_34, %c0_35, %c1] : memref<1x1x2xf32, #tpu.memory_space<smem>>
    } else {
    }
    return
  }
  func.func @transform_0(%arg0: i32, %arg1: i32) -> (i32, i32, i32) {
    %c0_i32 = arith.constant 0 : i32
    %c0_i32_0 = arith.constant 0 : i32
    return %arg0, %c0_i32, %arg1 : i32, i32, i32
  }
  func.func @transform_1(%arg0: i32, %arg1: i32) -> (i32, i32, i32) {
    %c0_i32 = arith.constant 0 : i32
    %c0_i32_0 = arith.constant 0 : i32
    return %arg0, %c0_i32, %arg1 : i32, i32, i32
  }
  func.func @transform_2(%arg0: i32, %arg1: i32) -> (i32, i32, i32) {
    %c0_i32 = arith.constant 0 : i32
    %c0_i32_0 = arith.constant 0 : i32
    return %arg0, %c0_i32, %arg1 : i32, i32, i32
  }
  func.func @transform_3(%arg0: i32, %arg1: i32) -> (i32, i32, i32) {
    %c0_i32 = arith.constant 0 : i32
    %c0_i32_0 = arith.constant 0 : i32
    %c0_i32_1 = arith.constant 0 : i32
    return %arg0, %c0_i32, %c0_i32_0 : i32, i32, i32
  }
}

</mosaic_0001>

<bundles_post_ra>
// kernel: tpu_custom_call.1
= control target key start
LH: loop header
LB: loop body
LE: loop exit
PB: predicated region body
PF: predicated region fallthrough
CT: control target
= control target key end

     0   :  { %8 = vsyncpa [#allocation5], 0  ;;  %s1173_s0 = inlined_call_operand.hbm [shape: f32[2,4,256], index: 0, kind: input, shape index: {}]   ;;  %s1174_s1 = inlined_call_operand.hbm [shape: s32[2,1,256], index: 1, kind: input, shape index: {}]   ;;  %s1175_s2 = inlined_call_operand.vmem [shape: f32[2,1,256], index: 2, kind: input, shape index: {}]   ;;  %s1176_s3 = inlined_call_operand.hbm [shape: f32[2,1,2], index: 3, kind: output, shape index: {}]  }
   0x1   :  { %10 = vsyncpa [#allocation5 + $0x1], 0 }
   0x2   :  { %11 = vsyncpa [#allocation8], 0 }
   0x3   :  { %13 = vsyncpa [#allocation8 + $0x1], 0 }
   0x4   :  { %14 = vsyncpa [#allocation6], 0 }
   0x5   :  { %16 = vsyncpa [#allocation6 + $0x1], 0  ;;  %s916_s12 = smov 0   ;;  %s918_s13 = smov 0  }
   0x6   :  { %s920_s14 = smov 0   ;;  %s922_s15 = smov 0  }
   0x7   :  { %s924_s16 = smov 0   ;;  %s926_s17 = smov 0  }
   0x8 LB: > { %s662_s18 = sadd.s32 4294967295, %s890_s17   ;;  %s663_s19 = sadd.s32 4294967294, %s890_s17   ;;  %s890_s17 = sphi %s926_s17, %s22_s17   ;;  %s886_s16 = sphi %s924_s16, %s1200_s16   ;;  %s882_s15 = sphi %s922_s15, %s1199_s15   ;;  %s878_s14 = sphi %s920_s14, %s1198_s14   ;;  %s874_s13 = sphi %s918_s13, %s1197_s13   ;;  %s870_s12 = sphi %s916_s12, %s1196_s12  }
   0x9   : > { %s34_s20 = sadd.s32 1, %s886_s16  ;;  %s43_s21 = sadd.s32 1, %s878_s14 }
   0xa   : > { %p36_p0 = scmp.ge.s32.totalorder %s34_s20, 2  ;;  %p50_p1 = scmp.ne.s32.totalorder %s878_s14, %s874_s13 }
   0xb   : > { %p51_p2 = scmp.eq.s32.totalorder %s890_s17, 0  ;;  %p56_p3 = scmp.ne.s32.totalorder %s874_s13, %s870_s12 }
   0xc   : > { %s1202_s20 = smov (%p36_p0, %s34_s20), 0  ;;  %p57_p5 = scmp.eq.s32.totalorder %s662_s18, 0 }
   0xd   : > { %p957_p4 = por %p51_p2, %p50_p1  ;;  %s38_s23 = ssub.s32 %s886_s16, %s1202_s20 }
   0xe   : > { %p136_p6 = scmp.eq.s32.totalorder %s662_s18, 1  ;;  %p41_p7 = scmp.eq.s32.totalorder %s38_s23, 0 }
   0xf   : > { %p963_p8 = por %p57_p5, %p56_p3  ;;  %p142_p10 = scmp.eq.s32.totalorder %s663_s19, 1 }
  0x10   : > { %p967_p9 = por %p136_p6, %p50_p1  ;;  %p1177_p12 = scmp.lt.s32.totalorder %s890_s17, 2 }
  0x11   : > { %s1182_s24 = scalar_select %p963_p8, 1, 0 }
  0x12   : > { %s1183_s25 = scalar_select %p967_p9, 1, 0 }
  0x13   : > { %s972_s26 = scalar_select %p41_p7, %s878_s14, %s43_s21  }
  0x14   : > { %p974_p11 = por %p142_p10, %p56_p3  ;;  %s980_s28 = sand.u32 1, %s878_s14  }
  0x15   : > { %s666_s29 = sshll.u32 %s980_s28, 3  ;;  %s681_s30 = sshll.u32 %s886_s16, 7 }
  0x16   : > { %s1184_s27 = scalar_select %p974_p11, 1, 0 }
  0x17   : > { %s987_s6 = scalar_lea.hbm %s1173_s0, %s681_s30  ;;  %s166_s7 = scalar_lea.vmem [#allocation4], %s666_s29 }
  0x18   : > { %s176_s8 = sshll.u32 %s166_s7, 4  ;;  %p995_p13 = pnand %p1177_p12, %p957_p4  ;;  %s989_s8 = int_to_ptr.vmem [resolvable:$true] %s176_s8 }
  0x19   : > { %s163_s10 = scalar_lea.sflag [#allocation5], %s980_s28  ;;  %s758_s11 = scalar_lea.hbm %s987_s6, 128 }
  0x1a   : > { %p759_p2 = scmp.ne.s32.totalorder %s987_s6, %s758_s11  ;;  %p760_p3 = pneg %p995_p13 }
  0x1b   : > { %s763_s21 = scalar_lea.hbm %s1173_s0, 256  ;;  %p764_p4 = scmp.lt.u32.totalorder %s987_s6, %s1173_s0 }
  0x1c   : > { %p761_p5 = pnand %p760_p3, %p759_p2  ;;  %p765_p7 = scmp.lt.u32.totalorder %s763_s21, %s758_s11 }
  0x1d   : > { %p767_p12 = scmp.lt.u32.totalorder %s758_s11, %s987_s6 }
  0x1e   : > { %p762_p6 = pneg %p761_p5  ;;  %p766_p10 = por %p765_p7, %p764_p4 }
  0x20   : > { %p768_p0 = por %p767_p12, %p766_p10 }
  0x22   : > { %p769_p1 = pnand %p768_p0, %p762_p6 }
  0x24   : > { %772 = shalt.err (!%p769_p1)
}
  0x25   : > { %s773_s29 = scalar_lea.vmem %s989_s8, 128  ;;  %s892_s30 = smov [#allocation4]  }
  0x26   : > { %p774_p2 = scmp.ne.s32.totalorder %s989_s8, %s773_s29  ;;  %s778_s4 = sshll.u32 %s892_s30, 4  ;;  %s779_s4 = int_to_ptr.vmem [resolvable:$false] %s778_s4 }
  0x27   : > { %s780_s5 = scalar_lea.vmem %s779_s4, 256  ;;  %p781_p9 = scmp.lt.s32.totalorder %s989_s8, %s779_s4 }
  0x28   : > { %p776_p5 = pnand %p774_p2, %p760_p3  ;;  %p782_p4 = scmp.lt.s32.totalorder %s780_s5, %s773_s29 }
  0x2a   : > { %p777_p11 = pneg %p776_p5  ;;  %p783_p7 = por %p782_p4, %p781_p9 }
  0x2c   : > { %p784_p12 = pnand %p783_p7, %p777_p11 }
  0x2e   : > { %787 = shalt.err (!%p784_p12)
}
  0x2f   : > { %696 = dma.hbm_to_vmem [thread:$0]  (!%p995_p13), %s987_s6, 128, %s989_s8, %s163_s10  }
  0x30   : > { %p1186_p0 = scmp.lt.s32.totalorder %s890_s17, 3  ;;  %p1187_p1 = scmp.ge.s32.totalorder %s890_s17, 1 }
  0x31   : > { %s669_s11 = sshll.u32 %s980_s28, 1  ;;  %s682_s18 = sshll.u32 %s886_s16, 5 }
  0x32   : > { %p1031_p6 = pnand %p1187_p1, %p1186_p0  ;;  %s1040_s22 = scalar_lea.hbm %s1174_s1, %s682_s18 }
  0x33   : > { %s187_s23 = scalar_lea.vmem [#allocation7], %s669_s11  ;;  %s184_s6 = scalar_lea.sflag [#allocation8], %s980_s28 }
  0x34   : > { %s1188_s7 = scalar_select %p1031_p6, 1, 0 }
  0x35   : > { %s197_s29 = sshll.u32 %s187_s23, 4  ;;  %s788_s8 = scalar_lea.hbm %s1040_s22, 32  ;;  %s198_s29 = int_to_ptr.vmem [resolvable:$true] %s197_s29 }
  0x36   : > { %p789_p9 = scmp.ne.s32.totalorder %s1040_s22, %s788_s8  ;;  %s793_s4 = scalar_lea.hbm %s1174_s1, 64 }
  0x37   : > { %p794_p2 = scmp.lt.u32.totalorder %s1040_s22, %s1174_s1  ;;  %p795_p5 = scmp.lt.u32.totalorder %s793_s4, %s788_s8 }
  0x38   : > { %p791_p11 = pnand %p789_p9, %p760_p3  ;;  %p797_p7 = scmp.lt.u32.totalorder %s788_s8, %s1040_s22 }
  0x39   : > { %p796_p4 = por %p795_p5, %p794_p2 }
  0x3a   : > { %p792_p10 = pneg %p791_p11 }
  0x3b   : > { %p798_p12 = por %p797_p7, %p796_p4 }
  0x3d   : > { %p799_p0 = pnand %p798_p12, %p792_p10 }
  0x3f   : > { %802 = shalt.err (!%p799_p0)
}
  0x40   : > { %s803_s28 = scalar_lea.vmem %s198_s29, 32  ;;  %s893_s11 = smov [#allocation7]  }
  0x41   : > { %p804_p1 = scmp.ne.s32.totalorder %s198_s29, %s803_s28  ;;  %s808_s19 = sshll.u32 %s893_s11, 4  ;;  %s809_s19 = int_to_ptr.vmem [resolvable:$false] %s808_s19 }
  0x42   : > { %s810_s21 = scalar_lea.vmem %s809_s19, 64  ;;  %p811_p8 = scmp.lt.s32.totalorder %s198_s29, %s809_s19 }
  0x43   : > { %p806_p9 = pnand %p804_p1, %p760_p3  ;;  %p812_p6 = scmp.lt.s32.totalorder %s810_s21, %s803_s28 }
  0x45   : > { %p807_p11 = pneg %p806_p9  ;;  %p813_p2 = por %p812_p6, %p811_p8 }
  0x47   : > { %p814_p5 = pnand %p813_p2, %p807_p11 }
  0x49   : > { %817 = shalt.err (!%p814_p5)
}
  0x4a   : > { %699 = dma.hbm_to_vmem [thread:$0]  (!%p995_p13), %s1040_s22, 32, %s198_s29, %s184_s6  }
  0x4b   : > { %p1189_p10 = scmp.ne.s32.totalorder %s1188_s7, 0 }
  0x4c   : > { %s1065_s23 = sand.u32 (!%p1189_p10), 1, %s874_s13   ;;  %p1190_p3 = scmp.ne.s32.totalorder (!%p1189_p10), %s1182_s24, 0 }
  0x4d   : > { %218 = sbr.rel (%p1189_p10) target bundleno = 394 (0x18a), region = 32  ;;  %s673_s8 = sshll.u32 (!%p1189_p10), %s1065_s23, 3 }
  0x4e   : > { %s221_s10 = scalar_lea.sflag (!%p1189_p10), [#allocation5], %s1065_s23  ;;  %s224_s30 = scalar_lea.vmem (!%p1189_p10), [#allocation4], %s673_s8 }
  0x54   : > { %857 = dma.done.wait (%p1190_p3), %s221_s10, 128  }
  0x55   : > { %859 = vsyncadd (%p1190_p3), %s221_s10, 4294967168  ;;  %s674_s9 = sshll.u32 %s1065_s23, 1  ;;  %s230_s7 = scalar_lea.sflag [#allocation8], %s1065_s23 }
  0x56   : > { %s1075_s22 = scalar_lea.vmem [#allocation7], %s674_s9 }
  0x57   : > { %861 = dma.done.wait (%p1190_p3), %s230_s7, 32  }
  0x58   : > { %863 = vsyncadd (%p1190_p3), %s230_s7, 4294967264  ;;  %p272_p8 = scmp.lt.s32.totalorder %s882_s15, 1  ;;  %v284_v0 = vlaneseq  ;;  %v894_v2 = vmov 0.0   ;;  %v895_v4 = vmov 1966171168   ;;  %vm304_vm1 = vcmask 1043456  }
  0x59   : > { %v385_v5 = vunpack.c.l.s4 %v895_v4  ;;  %v290_v6 = vld [vmem:[%s224_s30] sm:$0xff]  ;;  %v291_v36 = vld [vmem:[%s1075_s22] sm:$0x3]  ;;  %vm486_vm4 = vcmask 1040384   ;;  %s675_s18 = sshll.u32 %s1065_s23, 7  ;;  %s678_s11 = sshll.u32 %s882_s15, 4 }
  0x5a   : > { %s273_s29 = scalar_select %p272_p8, %s882_s15, 1  ;;  %vm1083_vm0 = vcmp.lt.s32.totalorder %v284_v0, 256  ;;  %v344_v3 = vshrl.u32 %v284_v0, 7  ;;  %v302_v11 = vcombine.high %v290_v6, %v290_v6  ;;  %v305_v12 = vsel %vm304_vm1, %v290_v6, -inf }
  0x5b   : > { %288 = vst.msk [vmem:[#allocation2] sm:$0x3] %vm1083_vm0, %v894_v2  ;;  %289 = vst.msk [vmem:[#allocation3] sm:$0x3] %vm1083_vm0, %v894_v2  ;;  %v386_v9 = vunpack.c.0.s8 %v385_v5  ;;  %v306_v13 = vrot.slane %v305_v12, 4  ;;  %s268_s19 = scalar_lea.smem [#allocation9], %s675_s18  ;;  %s539_s30 = scalar_lea.hbm %s1176_s3, %s678_s11 }
  0x5c   : > { %s676_s24 = sshll.u32 %s273_s29, 1  ;;  %v1094_v7 = vsub.s32 0, %v344_v3  ;;  %v1096_v8 = vsub.s32 1, %v344_v3  ;;  %v312_v16 = vsel %vm304_vm1, %v302_v11, -inf  ;;  %s525_s21 = scalar_lea.smem %s268_s19, 1 [#allocation9] }
  0x5d   : > { %s278_s5 = scalar_lea.vmem %s1175_s2, %s676_s24  ;;  %v307_v17 = vmax.f32 %v305_v12, %v306_v13  ;;  %v313_v18 = vrot.slane %v312_v16, 4  ;;  %v1106_v19 = vsub.s32 %v386_v9, %v344_v3  ;;  %s528_s7 = scalar_lea.sflag [#allocation6], %s1065_s23 }
  0x5e   : > { %v1098_v10 = vld [vmem:[%s278_s5] sm:$0x3]  ;;  %v348_v38 = vrot.slane %v291_v36, %v1094_v7  ;;  %v352_v39 = vrot.slane %v291_v36, %v1096_v8  ;;  %s818_s22 = scalar_lea.hbm %s539_s30, 16  ;;  %p1193_p6 = scmp.ne.s32.totalorder %s1183_s25, 0 }
  0x5f   : > { %v442_v14 = vrot.slane %v1098_v10, %v1094_v7  ;;  %v446_v15 = vrot.slane %v1098_v10, %v1096_v8  ;;  %v308_v21 = vrot.slane %v307_v17, 2  ;;  %v314_v22 = vmax.f32 %v312_v16, %v313_v18  ;;  %p819_p13 = scmp.ne.s32.totalorder %s539_s30, %s818_s22  ;;  %s822_s6 = scalar_lea.hbm %s1176_s3, 32 }
  0x60   : > { %vm353_vm2 = vcmp.eq.s32.totalorder %v344_v3, %v348_v38  ;;  %vm354_vm3 = vcmp.eq.s32.totalorder %v344_v3, %v352_v39  ;;  %p823_p12 = scmp.lt.u32.totalorder %s539_s30, %s1176_s3  ;;  %p824_p0 = scmp.lt.u32.totalorder %s822_s6, %s818_s22 }
  0x61   : > { %v453_v20 = vcombine.low %v442_v14, %v446_v15  ;;  %v309_v25 = vmax.f32 %v307_v17, %v308_v21  ;;  %v315_v26 = vrot.slane %v314_v22, 2  ;;  %p820_p4 = pnand %p819_p13, %p1193_p6  ;;  %p826_p9 = scmp.lt.u32.totalorder %s818_s22, %s539_s30 }
  0x62   : > { %v437_v24 = vld [vmem:[#allocation3] sm:$0x3]  ;;  %p825_p1 = por %p824_p0, %p823_p12 }
  0x63   : > { %v460_v23 = vrot.slane %v453_v20, %v1106_v19  ;;  %v310_v28 = vrot.slane %v309_v25, 1  ;;  %v316_v29 = vmax.f32 %v314_v22, %v315_v26  ;;  %p821_p7 = pneg %p820_p4 }
  0x64   : > { %p827_p11 = por %p826_p9, %p825_p1 }
  0x65   : > { %v467_v27 = vrot.slane %v460_v23, %v1106_v19  ;;  %v311_v31 = vmax.f32 %v309_v25, %v310_v28  ;;  %v317_v32 = vrot.slane %v316_v29, 1  ;;  %v380_v28 = vld [vmem:[#allocation2] sm:$0x3] }
  0x66   : > { %p828_p2 = pnand %p827_p11, %p821_p7 }
  0x67   : > { %v469_v30 = vadd.f32 %v467_v27, %v437_v24  ;;  %v318_v33 = vmax.f32 %v316_v29, %v317_v32 }
  0x69   : > { %470 = vst.msk [vmem:[#allocation3] sm:$0x3] %vm1083_vm0, %v469_v30  ;;  %v321_v34 = vcombine.low %v311_v31, %v318_v33 }
  0x6b   : > { %v323_v35 = vsub.f32 %v290_v6, %v321_v34 }
  0x6d   : > { %v324_v37 = vmul.f32 1.442695, %v323_v35  ;;  %v356_v40 = vcombine.high %v323_v35, %v323_v35  ;;  %v358_v41 = vsel %vm353_vm2, %v323_v35, 0.0 }
  0x6e   : > { %v360_v44 = vsel %vm304_vm1, %v358_v41, 0.0 }
  0x6f   : > { %752 = vpow2.f32 %v324_v37  ;;  %v359_v42 = vsel %vm354_vm3, %v356_v40, 0.0  ;;  %v361_v50 = vrot.slane %v360_v44, 4 }
  0x70   : > { %v367_v48 = vsel %vm304_vm1, %v359_v42, 0.0  ;;  %v501_v31 = vld [vmem:[#allocation3] sm:$0x3] }
  0x71   : > { %v368_v53 = vrot.slane %v367_v48, 4  ;;  %v362_v56 = vadd.f32 %v361_v50, %v360_v44  ;;  %v506_v32 = vrot.slane %v501_v31, %v1094_v7  ;;  %v510_v33 = vrot.slane %v501_v31, %v1096_v8 }
  0x73   : > { %v369_v59 = vadd.f32 %v368_v53, %v367_v48  ;;  %v363_v62 = vrot.slane %v362_v56, 2  ;;  %v513_v38 = vsel %vm486_vm4, %v506_v32, 0.0  ;;  %v514_v39 = vsel %vm486_vm4, %v510_v33, 0.0 }
  0x74   : > { %v515_v40 = vadd.f32 %v514_v39, %v513_v38 }
  0x75   : > { %v370_v2 = vrot.slane %v369_v59, 2  ;;  %v364_v4 = vadd.f32 %v363_v62, %v362_v56 }
  0x77   : > { %v371_v5 = vadd.f32 %v370_v2, %v369_v59  ;;  %v365_v6 = vrot.slane %v364_v4, 1 }
  0x79   : > { %v753_v43 = vpop.eup %752  ;;  %v372_v9 = vrot.slane %v371_v5, 1  ;;  %v366_v11 = vadd.f32 %v365_v6, %v364_v4 }
  0x7a   : > { %v327_v45 = vcombine.high %v753_v43, %v753_v43  ;;  %v329_v46 = vsel %vm304_vm1, %v753_v43, 0.0 }
  0x7b   : > { %v330_v47 = vrot.slane %v329_v46, 4  ;;  %v373_v13 = vadd.f32 %v372_v9, %v371_v5 }
  0x7c   : > { %v336_v49 = vsel %vm304_vm1, %v327_v45, 0.0 }
  0x7d   : > { %v331_v51 = vadd.f32 %v330_v47, %v329_v46  ;;  %v337_v52 = vrot.slane %v336_v49, 4 }
  0x7f   : > { %v332_v54 = vrot.slane %v331_v51, 2  ;;  %v338_v55 = vadd.f32 %v337_v52, %v336_v49 }
  0x81   : > { %v333_v57 = vadd.f32 %v332_v54, %v331_v51  ;;  %v339_v58 = vrot.slane %v338_v55, 2 }
  0x83   : > { %v334_v60 = vrot.slane %v333_v57, 1  ;;  %v340_v61 = vadd.f32 %v339_v58, %v338_v55 }
  0x85   : > { %v335_v63 = vadd.f32 %v334_v60, %v333_v57  ;;  %v341_v0 = vrot.slane %v340_v61, 1 }
  0x87   : > { %v342_v3 = vadd.f32 %v341_v0, %v340_v61  ;;  %754 = vlog2.f32 %v335_v63 }
  0x89   : > { %756 = vlog2.f32 %v342_v3 }
  0x91   : > { %v755_v12 = vpop.eup %754 }
  0x92   : > { %v375_v14 = vmul.f32 0.6931472, %v755_v12 }
  0x93   : > { %v757_v15 = vpop.eup %756 }
  0x94   : > { %v377_v16 = vmul.f32 0.6931472, %v757_v15  ;;  %v378_v17 = vsub.f32 %v375_v14, %v366_v11 }
  0x96   : > { %v379_v18 = vsub.f32 %v377_v16, %v373_v13 }
  0x98   : > { %v383_v20 = vcombine.low %v378_v17, %v379_v18 }
  0x9a   : > { %v390_v21 = vrot.slane %v383_v20, %v1106_v19 }
  0x9c   : > { %v397_v22 = vrot.slane %v390_v21, %v1106_v19 }
  0x9e   : > { %v399_v23 = vmul.f32 %v397_v22, %v1098_v10 }
  0xa0   : > { %v404_v24 = vrot.slane %v399_v23, %v1094_v7  ;;  %v408_v25 = vrot.slane %v399_v23, %v1096_v8 }
  0xa2   : > { %v415_v26 = vcombine.low %v404_v24, %v408_v25 }
  0xa4   : > { %v422_v27 = vrot.slane %v415_v26, %v1106_v19 }
  0xa6   : > { %v429_v29 = vrot.slane %v422_v27, %v1106_v19 }
  0xa8   : > { %v431_v30 = vadd.f32 %v429_v29, %v380_v28 }
  0xaa   : > { %436 = vst.msk [vmem:[#allocation2] sm:$0x3] %vm1083_vm0, %v431_v30 }
  0xb1   : > { %v474_v10 = vld [vmem:[#allocation2] sm:$0x3] }
  0xb2   : > { %v479_v34 = vrot.slane %v474_v10, %v1094_v7  ;;  %v483_v35 = vrot.slane %v474_v10, %v1096_v8 }
  0xb4   : > { %v487_v36 = vsel %vm486_vm4, %v479_v34, 0.0  ;;  %v488_v37 = vsel %vm486_vm4, %v483_v35, 0.0 }
  0xb5   : > { %v489_v19 = vadd.f32 %v488_v37, %v487_v36 }
  0xb7   : > { %490 = vadd.xlane.f32.xlu0 %v489_v19 }
  0xbb   : > { %516 = vadd.xlane.f32.xlu0 %v515_v40 }
 0x144   : > { %v491_v1 = vpop.xlane.xlu0 %490 }
 0x145   : > { %v492_v41 = vrot.slane %v491_v1, 4 }
 0x147   : > { %v493_v42 = vadd.f32 %v492_v41, %v491_v1 }
 0x148   : > { %v517_v43 = vpop.xlane.xlu0 %516 }
 0x149   : > { %v494_v44 = vrot.slane %v493_v42, 2  ;;  %v518_v45 = vrot.slane %v517_v43, 4 }
 0x14b   : > { %v519_v46 = vadd.f32 %v518_v45, %v517_v43  ;;  %v495_v7 = vadd.f32 %v494_v44, %v493_v42 }
 0x14d   : > { %v520_v47 = vrot.slane %v519_v46, 2  ;;  %v496_v8 = vrot.slane %v495_v7, 1 }
 0x14f   : > { %v521_v48 = vadd.f32 %v520_v47, %v519_v46  ;;  %v497_v49 = vadd.f32 %v496_v8, %v495_v7 }
 0x151   : > { %683 = vpush %v497_v49  ;;  %v522_v50 = vrot.slane %v521_v48, 1 }
 0x153   : > { %v523_v51 = vadd.f32 %v522_v50, %v521_v48 }
 0x155   : > { %685 = vpush %v523_v51 }
 0x182   : > { %s684_s28 = spop %683 }
 0x183   : > { %500 = sst [smem:[%s268_s19]] %s684_s28 }
 0x186   : > { %s686_s9 = spop %685 }
 0x187   : > { %526 = sst [smem:[%s525_s21]] %s686_s9 }
 0x188   : > { %831 = shalt.err (!%p828_p2)
}
 0x189   : > { %691 = dma.smem_to_hbm (%p1193_p6), %s268_s19, 16, %s539_s30, %s528_s7  }
 0x18a PF: > { %p1194_p5 = scmp.lt.s32.totalorder %s890_s17, 2 }
 0x18b   : > { %s551_s23 = sand.u32 (!%p1194_p5), 1, %s870_s12   ;;  %p1195_p10 = scmp.ne.s32.totalorder (!%p1194_p5), %s1184_s27, 0 }
 0x18c   : > { %546 = sbr.rel (%p1194_p5) target bundleno = 406 (0x196), region = 56  ;;  %s552_s5 = scalar_lea.sflag (!%p1194_p5), [#allocation6], %s551_s23 }
 0x193   : > { %865 = dma.done.wait (%p1195_p10), %s552_s5, 16  }
 0x194   : > { %867 = vsyncadd (%p1195_p10), %s552_s5, 4294967280 }
 0x195   : > { %557 = sfence }
 0x196 PF: > { %s22_s17 = sadd.s32 1, %s890_s17   ;;  %s1196_s12 = smov %s874_s13 }
 0x197   : > { %p19_p3 = scmp.ge.s32.totalorder %s22_s17, 4   ;;  %s1197_s13 = smov %s878_s14 }
 0x198   : > { %s1198_s14 = smov %s972_s26  ;;  %s1199_s15 = smov %s886_s16 }
 0x199   : > { %s1200_s16 = smov %s1202_s20  ;;  %21 = sbr.rel (!%p19_p3) target bundleno = 8 (0x8), region = 103 }
 0x1a0   :  { %558 = vsyncpa [#allocation5], 1 }
 0x1a1   :  { %560 = vsyncpa [#allocation5 + $0x1], 1 }
 0x1a2   :  { %561 = vsyncpa [#allocation8], 1 }
 0x1a3   :  { %563 = vsyncpa [#allocation8 + $0x1], 1 }
 0x1a4   :  { %564 = vsyncpa [#allocation6], 1 }
 0x1a5   :  { %566 = vsyncpa [#allocation6 + $0x1], 1 }

</bundles_post_ra>
